<compile_context>
chip_gen: v6e
topology: v6e:2x2x1
jax: 0.10.0
libtpu: 0.0.40
codegen_flags: <defaults>
</compile_context>

<pallas_src>
import jax
import jax.numpy as jnp
from jax import lax
from jax.experimental import pallas as pl
from jax.experimental.pallas import tpu as pltpu


def _round_up(a, b):
    return (a + b - 1) // b * b


def _physical_vmem_bytes():
    """Per-core VMEM capacity; conservative fallback if the query fails."""
    try:
        info = pltpu.get_tpu_info()
        for name in ("vmem_capacity_bytes", "vmem_size_bytes", "vmem_bytes"):
            v = getattr(info, name, None)
            if v:
                return int(v)
    except Exception:
        pass
    return 64 * 1024 * 1024  # v7x per-TC value: safe lower bound everywhere.


def _block_spec(shape, index_map, buffers=None):
    """BlockSpec with an optional pipeline buffer-count override."""
    if buffers is None:
        return pl.BlockSpec(shape, index_map)
    try:
        return pl.BlockSpec(shape, index_map, pipeline_mode=pl.Buffered(buffers))
    except (TypeError, AttributeError):   # older jax: fall back to default buffering
        return pl.BlockSpec(shape, index_map)


def _vmem_budget_bytes(tm, th, D, H, io_bytes, w_bytes, h_split):
    w_buf = 2 if h_split else 1
    io = 2 * 2 * tm * D * io_bytes              # x in + y out tiles, double-buffered
    wts = w_buf * 2 * D * th * w_bytes          # W1 + W2 slabs
    small = (2 * D + th + D) * 4 * 2            # gamma/beta/b1/b2
    scratch = tm * D * (w_bytes + 4)            # xn (bf16) + f32 accumulator
    inter = tm * th * (4 + w_bytes)             # f32 hidden + bf16 copy for GEMM2
    return io + wts + small + scratch + inter


def _pick_tiles(M, D, H, io_bytes, w_bytes, vmem_cap, tile_m_req, tile_h_req):
    tile_m = max(16, min(_round_up(tile_m_req, 16), _round_up(M, 16)))
    # Keep >= 2 row-grid steps so the second TensorCore on v7x gets work.
    if M > 16:
        tile_m = min(tile_m, _round_up(pl.cdiv(M, 2), 16))

    if tile_h_req is not None:
        return tile_m, tile_h_req

    tile_h = H
    # Shrink tile_h first (keeps row tiles big, streams weight slabs), then
    # tile_m, until the working set fits the per-generation budget.
    while _vmem_budget_bytes(tile_m, tile_h, D, H, io_bytes, w_bytes,
                             tile_h < H) > vmem_cap:
        if tile_h > 512 and tile_h % 2 == 0 and (tile_h // 2) % 128 == 0:
            tile_h //= 2
        elif tile_m > 128:
            tile_m = max(128, _round_up(tile_m // 2, 16))
        elif tile_h > 128 and tile_h % 2 == 0 and (tile_h // 2) % 128 == 0:
            tile_h //= 2
        elif tile_m > 16:
            tile_m = max(16, _round_up(tile_m // 2, 16))
        else:
            break
    return tile_m, tile_h


def enc_ff_kernel(x_ref, gamma_ref, beta_ref, w1_ref, b1_ref, w2_ref, b2_ref,
                  o_ref, xn_ref, acc_ref):
    h_idx = pl.program_id(1)

    @pl.when(h_idx == 0)
    def _():
        # LayerNorm (eps=1e-5, f32) once per row tile; stash the normalized
        # activations in bf16 scratch so every H slab reuses them on the MXU.
        x = x_ref[...].astype(jnp.float32)
        mean = jnp.mean(x, axis=-1, keepdims=True)
        centered = x - mean
        var = jnp.mean(centered * centered, axis=-1, keepdims=True)
        xn = centered * lax.rsqrt(var + 1e-5)
        xn = xn * gamma_ref[...].astype(jnp.float32) + beta_ref[...].astype(jnp.float32)
        xn_ref[...] = xn.astype(xn_ref.dtype)
        acc_ref[...] = jnp.zeros_like(acc_ref)

    # Linear(D -> TH) slab: bf16 operands on the MXU, f32 accumulation.
    h = jnp.dot(xn_ref[...], w1_ref[...], preferred_element_type=jnp.float32)
    h = h + b1_ref[...].astype(jnp.float32)
    # Swish: h * sigmoid(h)  (f32; sigmoid goes to the EUP).
    h = h * jax.nn.sigmoid(h)
    # TODO(synk): training-mode dropout (p=0.1) would mask `h` / the final
    # output via pltpu.prng_random_bits; inference keeps it as identity.

    # Linear(TH -> D) partial sum into the f32 accumulator.
    acc_ref[...] += jnp.dot(h.astype(w2_ref.dtype), w2_ref[...],
                            preferred_element_type=jnp.float32)

    @pl.when(h_idx == pl.num_programs(1) - 1)
    def _():
        o_ref[...] = (acc_ref[...] + b2_ref[...].astype(jnp.float32)).astype(o_ref.dtype)


def enc_feed_forward(x, gamma, beta, w1, b1, w2, b2, *,
                     tile_m=1024, tile_h=None, matmul_dtype=jnp.bfloat16):
    """x: (B, T, D). Weights laid out as x @ W, i.e. (in, out).

    Weights should be persisted in `matmul_dtype` (bf16) by the caller so the
    cast is not re-issued on every invocation; f32 weights are cast here only
    as a fallback.
    """
    B, T, D = x.shape
    H = w1.shape[1]
    M = B * T

    io_bytes = jnp.dtype(x.dtype).itemsize
    w_bytes = jnp.dtype(matmul_dtype).itemsize

    phys_vmem = _physical_vmem_bytes()
    vmem_cap = int(phys_vmem * 0.70)        # tile-selection budget
    vmem_limit = int(phys_vmem * 0.85)      # scoped limit handed to Mosaic

    tile_m, tile_h = _pick_tiles(M, D, H, io_bytes, w_bytes, vmem_cap,
                                 tile_m, tile_h)
    assert H % tile_h == 0 and (tile_h == H or tile_h % 128 == 0), (
        "tile_h must divide H and be a multiple of 128 (or equal H)")
    num_h = H // tile_h
    num_m = pl.cdiv(M, tile_m)

    # No wrapper-side padding: Pallas handles the partial last row tile, and
    # every op is row-wise so padded-lane garbage never leaks into valid rows.
    x2 = x.reshape(M, D)
    gamma2 = gamma.reshape(1, D)
    beta2 = beta.reshape(1, D)
    b1_2 = b1.reshape(1, H)
    b2_2 = b2.reshape(1, D)
    w1c = w1 if w1.dtype == matmul_dtype else w1.astype(matmul_dtype)
    w2c = w2 if w2.dtype == matmul_dtype else w2.astype(matmul_dtype)

    cost = pl.CostEstimate(
        flops=4 * M * D * H,                # two GEMMs, 2 flops/MAC
        transcendentals=M * H,              # sigmoid
        bytes_accessed=(2 * M * D * io_bytes
                        + 2 * D * H * w_bytes
                        + (2 * D + H + D) * 4),
    )

    # Grid-invariant operands are single-buffered; streamed weight slabs are
    # double-buffered only when the H axis is actually split.
    w_bufs = 1 if num_h == 1 else 2

    out = pl.pallas_call(
        enc_ff_kernel,
        out_shape=jax.ShapeDtypeStruct((M, D), x.dtype),
        grid_spec=pltpu.PrefetchScalarGridSpec(
            num_scalar_prefetch=0,
            grid=(num_m, num_h),
            in_specs=[
                _block_spec((tile_m, D), lambda i, h: (i, 0)),                 # x rows
                _block_spec((1, D), lambda i, h: (0, 0), buffers=1),           # gamma
                _block_spec((1, D), lambda i, h: (0, 0), buffers=1),           # beta
                _block_spec((D, tile_h), lambda i, h: (0, h), buffers=w_bufs),  # W1 slab
                _block_spec((1, tile_h), lambda i, h: (0, h), buffers=w_bufs),  # b1 slab
                _block_spec((tile_h, D), lambda i, h: (h, 0), buffers=w_bufs),  # W2 slab
                _block_spec((1, D), lambda i, h: (0, 0), buffers=1),           # b2
            ],
            out_specs=pl.BlockSpec((tile_m, D), lambda i, h: (i, 0)),
            scratch_shapes=[
                pltpu.VMEM((tile_m, D), matmul_dtype),   # normalized activations
                pltpu.VMEM((tile_m, D), jnp.float32),    # GEMM2 accumulator
            ],
        ),
        compiler_params=pltpu.CompilerParams(
            dimension_semantics=("parallel", "arbitrary"),
            vmem_limit_bytes=vmem_limit,
        ),
        cost_estimate=cost,
    )(x2, gamma2, beta2, w1c, b1_2, w2c, b2_2)

    return out.reshape(B, T, D)


def reference(x, gamma, beta, w1, b1, w2, b2, matmul_dtype=jnp.bfloat16):
    xf = x.astype(jnp.float32)
    mean = jnp.mean(xf, axis=-1, keepdims=True)
    var = jnp.mean((xf - mean) ** 2, axis=-1, keepdims=True)
    xn = (xf - mean) * lax.rsqrt(var + 1e-5) * gamma + beta
    h = jnp.dot(xn.astype(matmul_dtype), w1.astype(matmul_dtype),
                preferred_element_type=jnp.float32) + b1
    h = h * jax.nn.sigmoid(h)
    y = jnp.dot(h.astype(matmul_dtype), w2.astype(matmul_dtype),
                preferred_element_type=jnp.float32) + b2
    return y.astype(x.dtype)


if __name__ == "__main__":
    # Small module-consistent shapes; encoder_dim=128 keeps all last dims
    # lane-dense. T=13 exercises the partial-last-row-tile path (no wrapper pad).
    # Note: D=128 only half-fills the 256-wide MXU on v6e/v7x; prefer D multiples
    # of 256 where the model allows.
    B, T, D, FF = 2, 13, 128, 4
    H = D * FF

    key = jax.random.PRNGKey(0)
    kx, kg, kb, kw1, kb1, kw2, kb2 = jax.random.split(key, 7)

    x = jax.random.normal(kx, (B, T, D), dtype=jnp.float32)

    # nn.LayerNorm / nn.Linear-shaped parameters. PyTorch Linear weight is
    # (out, in); we store the transposed (in, out) layout expected by x @ W.
    gamma = 1.0 + 0.1 * jax.random.normal(kg, (D,), dtype=jnp.float32)
    beta = 0.1 * jax.random.normal(kb, (D,), dtype=jnp.float32)
    w1 = jax.random.normal(kw1, (D, H), dtype=jnp.float32) / jnp.sqrt(D)
    b1 = 0.01 * jax.random.normal(kb1, (H,), dtype=jnp.float32)
    w2 = jax.random.normal(kw2, (H, D), dtype=jnp.float32) / jnp.sqrt(H)
    b2 = 0.01 * jax.random.normal(kb2, (D,), dtype=jnp.float32)

    # Persist MXU-dtype weights once, outside the per-call path.
    w1_bf = w1.astype(jnp.bfloat16)
    w2_bf = w2.astype(jnp.bfloat16)

    y_ref = reference(x, gamma, beta, w1, b1, w2, b2)

    # Fused path (single H slab).
    y = enc_feed_forward(x, gamma, beta, w1_bf, b1, w2_bf, b2)
    y = jax.block_until_ready(y)
    assert y.shape == (B, T, D)
    assert jnp.allclose(y, y_ref, atol=1e-2, rtol=1e-2), "mismatch (fused path)"

    # H-streaming / accumulator path (weight slabs + f32 accumulator).
    y_split = enc_feed_forward(x, gamma, beta, w1_bf, b1, w2_bf, b2, tile_h=128)
    y_split = jax.block_until_ready(y_split)
    assert jnp.allclose(y_split, y_ref, atol=1e-2, rtol=1e-2), "mismatch (H-split path)"

    print("KERNEL_OK")
</pallas_src>

<mosaic_0001>
module attributes {stable_mosaic.version = 11 : i64} {
  func.func @enc_ff_kernel(%arg0: i32, %arg1: i32, %arg2: memref<16x128xf32, #tpu.memory_space<vmem>>, %arg3: memref<1x128xf32, #tpu.memory_space<vmem>>, %arg4: memref<1x128xf32, #tpu.memory_space<vmem>>, %arg5: memref<128x512xbf16, #tpu.memory_space<vmem>>, %arg6: memref<1x512xf32, #tpu.memory_space<vmem>>, %arg7: memref<512x128xbf16, #tpu.memory_space<vmem>>, %arg8: memref<1x128xf32, #tpu.memory_space<vmem>>, %arg9: memref<16x128xf32, #tpu.memory_space<vmem>>, %arg10: memref<16x128xbf16, #tpu.memory_space<vmem>>, %arg11: memref<16x128xf32, #tpu.memory_space<vmem>>) attributes {dimension_semantics = [#tpu.dimension_semantics<parallel>, #tpu.dimension_semantics<arbitrary>], iteration_bounds = array<i64: 2, 1>, scalar_prefetch = 0 : i64, scratch_operands = 2 : i64, tpu.core_type = #tpu.core_type<tc>, window_params = [{transform_indices = @transform_0, window_bounds = array<i64: 16, 128>}, {pipeline_mode = #tpu.pipeline_mode<synchronous>, transform_indices = @transform_1, window_bounds = array<i64: 1, 128>}, {pipeline_mode = #tpu.pipeline_mode<synchronous>, transform_indices = @transform_2, window_bounds = array<i64: 1, 128>}, {pipeline_mode = #tpu.pipeline_mode<synchronous>, transform_indices = @transform_3, window_bounds = array<i64: 128, 512>}, {pipeline_mode = #tpu.pipeline_mode<synchronous>, transform_indices = @transform_4, window_bounds = array<i64: 1, 512>}, {pipeline_mode = #tpu.pipeline_mode<synchronous>, transform_indices = @transform_5, window_bounds = array<i64: 512, 128>}, {pipeline_mode = #tpu.pipeline_mode<synchronous>, transform_indices = @transform_6, window_bounds = array<i64: 1, 128>}, {transform_indices = @transform_7, window_bounds = array<i64: 16, 128>}]} {
    %c0_i32 = arith.constant 0 : i32
    %0 = arith.cmpi eq, %arg1, %c0_i32 : i32
    %1 = arith.extui %0 : i1 to i32
    %c0_i32_0 = arith.constant 0 : i32
    %2 = arith.cmpi ne, %1, %c0_i32_0 : i32
    scf.if %2 {
      %c0_16 = arith.constant 0 : index
      %c0_17 = arith.constant 0 : index
      %24 = vector.load %arg2[%c0_16, %c0_17] : memref<16x128xf32, #tpu.memory_space<vmem>>, vector<16x128xf32>
      %cst_18 = arith.constant dense<0.000000e+00> : vector<16xf32>
      %25 = vector.multi_reduction <add>, %24, %cst_18 [1] : vector<16x128xf32> to vector<16xf32>
      %26 = vector.shape_cast %25 : vector<16xf32> to vector<16x1xf32>
      %cst_19 = arith.constant 1.280000e+02 : f32
      %27 = vector.broadcast %cst_19 : f32 to vector<16x1xf32>
      %28 = arith.divf %26, %27 : vector<16x1xf32>
      %29 = vector.broadcast %28 : vector<16x1xf32> to vector<16x128xf32>
      %30 = arith.subf %24, %29 : vector<16x128xf32>
      %31 = arith.mulf %30, %30 : vector<16x128xf32>
      %cst_20 = arith.constant dense<0.000000e+00> : vector<16xf32>
      %32 = vector.multi_reduction <add>, %31, %cst_20 [1] : vector<16x128xf32> to vector<16xf32>
      %33 = vector.shape_cast %32 : vector<16xf32> to vector<16x1xf32>
      %cst_21 = arith.constant 1.280000e+02 : f32
      %34 = vector.broadcast %cst_21 : f32 to vector<16x1xf32>
      %35 = arith.divf %33, %34 : vector<16x1xf32>
      %cst_22 = arith.constant 9.99999974E-6 : f32
      %36 = vector.broadcast %cst_22 : f32 to vector<16x1xf32>
      %37 = arith.addf %35, %36 : vector<16x1xf32>
      %38 = math.rsqrt %37 : vector<16x1xf32>
      %39 = vector.broadcast %38 : vector<16x1xf32> to vector<16x128xf32>
      %40 = arith.mulf %30, %39 : vector<16x128xf32>
      %c0_23 = arith.constant 0 : index
      %c0_24 = arith.constant 0 : index
      %41 = vector.load %arg3[%c0_23, %c0_24] : memref<1x128xf32, #tpu.memory_space<vmem>>, vector<1x128xf32>
      %42 = vector.broadcast %41 : vector<1x128xf32> to vector<16x128xf32>
      %43 = arith.mulf %40, %42 : vector<16x128xf32>
      %c0_25 = arith.constant 0 : index
      %c0_26 = arith.constant 0 : index
      %44 = vector.load %arg4[%c0_25, %c0_26] : memref<1x128xf32, #tpu.memory_space<vmem>>, vector<1x128xf32>
      %45 = vector.broadcast %44 : vector<1x128xf32> to vector<16x128xf32>
      %46 = arith.addf %43, %45 : vector<16x128xf32>
      %47 = arith.truncf %46 : vector<16x128xf32> to vector<16x128xbf16>
      %c0_27 = arith.constant 0 : index
      %c0_28 = arith.constant 0 : index
      %48 = vector.load %arg10[%c0_27, %c0_28] : memref<16x128xbf16, #tpu.memory_space<vmem>>, vector<16x128xbf16>
      tpu.vector_store %arg10[%c0_27, %c0_28], %47 {strides = array<i32>} : memref<16x128xbf16, #tpu.memory_space<vmem>>, vector<16x128xbf16>,
      %cst_29 = arith.constant 0.000000e+00 : f32
      %49 = vector.broadcast %cst_29 : f32 to vector<16x128xf32>
      %c0_30 = arith.constant 0 : index
      %c0_31 = arith.constant 0 : index
      %50 = vector.load %arg11[%c0_30, %c0_31] : memref<16x128xf32, #tpu.memory_space<vmem>>, vector<16x128xf32>
      tpu.vector_store %arg11[%c0_30, %c0_31], %49 {strides = array<i32>} : memref<16x128xf32, #tpu.memory_space<vmem>>, vector<16x128xf32>,
    } else {
    }
    %c0 = arith.constant 0 : index
    %c0_1 = arith.constant 0 : index
    %3 = vector.load %arg10[%c0, %c0_1] : memref<16x128xbf16, #tpu.memory_space<vmem>>, vector<16x128xbf16>
    %c0_2 = arith.constant 0 : index
    %c0_3 = arith.constant 0 : index
    %4 = vector.load %arg5[%c0_2, %c0_3] : memref<128x512xbf16, #tpu.memory_space<vmem>>, vector<128x512xbf16>
    %cst = arith.constant dense<0.000000e+00> : vector<16x512xf32>
    %5 = tpu.matmul %3, %4, %cst {dimension_numbers = #tpu.dot_dimension_numbers<[1], [0], [0], [1], [0, 0, 1, 1], [], []>} : vector<16x128xbf16>, vector<128x512xbf16>, vector<16x512xf32> -> vector<16x512xf32>
    %c0_4 = arith.constant 0 : index
    %c0_5 = arith.constant 0 : index
    %6 = vector.load %arg6[%c0_4, %c0_5] : memref<1x512xf32, #tpu.memory_space<vmem>>, vector<1x512xf32>
    %7 = vector.broadcast %6 : vector<1x512xf32> to vector<16x512xf32>
    %8 = arith.addf %5, %7 : vector<16x512xf32>
    %9 = arith.negf %8 : vector<16x512xf32>
    %10 = math.exp %9 : vector<16x512xf32>
    %cst_6 = arith.constant 1.000000e+00 : f32
    %11 = vector.broadcast %cst_6 : f32 to vector<16x512xf32>
    %12 = arith.addf %11, %10 : vector<16x512xf32>
    %13 = arith.divf %11, %12 : vector<16x512xf32>
    %14 = arith.mulf %8, %13 : vector<16x512xf32>
    %c0_7 = arith.constant 0 : index
    %c0_8 = arith.constant 0 : index
    %15 = vector.load %arg11[%c0_7, %c0_8] : memref<16x128xf32, #tpu.memory_space<vmem>>, vector<16x128xf32>
    %16 = arith.truncf %14 : vector<16x512xf32> to vector<16x512xbf16>
    %c0_9 = arith.constant 0 : index
    %c0_10 = arith.constant 0 : index
    %17 = vector.load %arg7[%c0_9, %c0_10] : memref<512x128xbf16, #tpu.memory_space<vmem>>, vector<512x128xbf16>
    %cst_11 = arith.constant dense<0.000000e+00> : vector<16x128xf32>
    %18 = tpu.matmul %16, %17, %cst_11 {dimension_numbers = #tpu.dot_dimension_numbers<[1], [0], [0], [1], [0, 0, 1, 1], [], []>} : vector<16x512xbf16>, vector<512x128xbf16>, vector<16x128xf32> -> vector<16x128xf32>
    %19 = arith.addf %15, %18 : vector<16x128xf32>
    %c0_12 = arith.constant 0 : index
    %c0_13 = arith.constant 0 : index
    %20 = vector.load %arg11[%c0_12, %c0_13] : memref<16x128xf32, #tpu.memory_space<vmem>>, vector<16x128xf32>
    tpu.vector_store %arg11[%c0_12, %c0_13], %19 {strides = array<i32>} : memref<16x128xf32, #tpu.memory_space<vmem>>, vector<16x128xf32>,
    %c0_i32_14 = arith.constant 0 : i32
    %21 = arith.cmpi eq, %arg1, %c0_i32_14 : i32
    %22 = arith.extui %21 : i1 to i32
    %c0_i32_15 = arith.constant 0 : i32
    %23 = arith.cmpi ne, %22, %c0_i32_15 : i32
    scf.if %23 {
      %c0_16 = arith.constant 0 : index
      %c0_17 = arith.constant 0 : index
      %24 = vector.load %arg11[%c0_16, %c0_17] : memref<16x128xf32, #tpu.memory_space<vmem>>, vector<16x128xf32>
      %c0_18 = arith.constant 0 : index
      %c0_19 = arith.constant 0 : index
      %25 = vector.load %arg8[%c0_18, %c0_19] : memref<1x128xf32, #tpu.memory_space<vmem>>, vector<1x128xf32>
      %26 = vector.broadcast %25 : vector<1x128xf32> to vector<16x128xf32>
      %27 = arith.addf %24, %26 : vector<16x128xf32>
      %c0_20 = arith.constant 0 : index
      %c0_21 = arith.constant 0 : index
      %28 = vector.load %arg9[%c0_20, %c0_21] : memref<16x128xf32, #tpu.memory_space<vmem>>, vector<16x128xf32>
      tpu.vector_store %arg9[%c0_20, %c0_21], %27 {strides = array<i32>} : memref<16x128xf32, #tpu.memory_space<vmem>>, vector<16x128xf32>,
    } else {
    }
    return
  }
  func.func @transform_0(%arg0: i32, %arg1: i32) -> (i32, i32) {
    %c0_i32 = arith.constant 0 : i32
    %c0_i32_0 = arith.constant 0 : i32
    return %arg0, %c0_i32 : i32, i32
  }
  func.func @transform_1(%arg0: i32, %arg1: i32) -> (i32, i32) {
    %c0_i32 = arith.constant 0 : i32
    %c0_i32_0 = arith.constant 0 : i32
    %c0_i32_1 = arith.constant 0 : i32
    return %c0_i32, %c0_i32_0 : i32, i32
  }
  func.func @transform_2(%arg0: i32, %arg1: i32) -> (i32, i32) {
    %c0_i32 = arith.constant 0 : i32
    %c0_i32_0 = arith.constant 0 : i32
    %c0_i32_1 = arith.constant 0 : i32
    return %c0_i32, %c0_i32_0 : i32, i32
  }
  func.func @transform_3(%arg0: i32, %arg1: i32) -> (i32, i32) {
    %c0_i32 = arith.constant 0 : i32
    %c0_i32_0 = arith.constant 0 : i32
    return %c0_i32, %arg1 : i32, i32
  }
  func.func @transform_4(%arg0: i32, %arg1: i32) -> (i32, i32) {
    %c0_i32 = arith.constant 0 : i32
    %c0_i32_0 = arith.constant 0 : i32
    return %c0_i32, %arg1 : i32, i32
  }
  func.func @transform_5(%arg0: i32, %arg1: i32) -> (i32, i32) {
    %c0_i32 = arith.constant 0 : i32
    %c0_i32_0 = arith.constant 0 : i32
    return %arg1, %c0_i32 : i32, i32
  }
  func.func @transform_6(%arg0: i32, %arg1: i32) -> (i32, i32) {
    %c0_i32 = arith.constant 0 : i32
    %c0_i32_0 = arith.constant 0 : i32
    %c0_i32_1 = arith.constant 0 : i32
    return %c0_i32, %c0_i32_0 : i32, i32
  }
  func.func @transform_7(%arg0: i32, %arg1: i32) -> (i32, i32) {
    %c0_i32 = arith.constant 0 : i32
    %c0_i32_0 = arith.constant 0 : i32
    return %arg0, %c0_i32 : i32, i32
  }
}

</mosaic_0001>

<bundles_post_ra>
// kernel: tpu_custom_call.1
= control target key start
LH: loop header
LB: loop body
LE: loop exit
PB: predicated region body
PF: predicated region fallthrough
CT: control target
= control target key end

     0   :  { %s2096_s0 = inlined_call_operand.hbm [shape: f32[26,128], index: 0, kind: input, shape index: {}]   ;;  %s2097_s1 = inlined_call_operand.vmem [shape: f32[1,128], index: 1, kind: input, shape index: {}]   ;;  %s2098_s2 = inlined_call_operand.vmem [shape: f32[1,128], index: 2, kind: input, shape index: {}]   ;;  %s2099_s3 = inlined_call_operand.hbm [shape: bf16[128,512], index: 3, kind: input, shape index: {}]   ;;  %s2100_s4 = inlined_call_operand.vmem [shape: f32[1,512], index: 4, kind: input, shape index: {}]   ;;  %s2101_s5 = inlined_call_operand.hbm [shape: bf16[512,128], index: 5, kind: input, shape index: {}]   ;;  %s2102_s6 = inlined_call_operand.vmem [shape: f32[1,128], index: 6, kind: input, shape index: {}]   ;;  %s2103_s7 = inlined_call_operand.hbm [shape: f32[26,128], index: 7, kind: output, shape index: {}]  }
   0x1   :  { %2108 = sst [smem:[#allocation15_spill]] %s2099_s3 }
   0x2   :  { %2109 = sst [smem:[#allocation16_spill]] %s2101_s5 }
   0x3   :  { %12 = vsyncpa [#allocation5], 0 }
   0x4   :  { %14 = vsyncpa [#allocation5 + $0x1], 0 }
   0x5   :  { %15 = vsyncpa [#allocation8], 0 }
   0x6   :  { %16 = vsyncpa [#allocation6], 0 }
   0x7   :  { %18 = vsyncpa [#allocation6 + $0x1], 0  ;;  %s1874_s24 = smov 0   ;;  %s1876_s25 = smov 0  }
   0x8   :  { %s1878_s26 = smov 0   ;;  %s1880_s27 = smov 0  }
   0x9   :  { %s1882_s28 = smov 0   ;;  %s1884_s29 = smov 0  }
   0xa LB: > { %s1295_s30 = sadd.s32 4294967295, %s1819_s29   ;;  %s1296_s8 = sadd.s32 4294967294, %s1819_s29   ;;  %s1819_s29 = sphi %s1884_s29, %s24_s29   ;;  %s1815_s28 = sphi %s1882_s28, %s2130_s28   ;;  %s1811_s27 = sphi %s1880_s27, %s2129_s27   ;;  %s1807_s26 = sphi %s1878_s26, %s2128_s26   ;;  %s1803_s25 = sphi %s1876_s25, %s2127_s25   ;;  %s1799_s24 = sphi %s1874_s24, %s2126_s24  }
   0xb   : > { %p56_p0 = scmp.ne.s32.totalorder %s1803_s25, %s1799_s24  ;;  %p1908_p1 = scmp.eq.s32.totalorder %s1295_s30, 0 }
   0xc   : > { %p1912_p2 = scmp.eq.s32.totalorder %s1295_s30, 1  ;;  %p227_p3 = scmp.eq.s32.totalorder %s1296_s8, 1 }
   0xd   : > { %s2110_s9 = scalar_select %p1908_p1, 1, 0 }
   0xe   : > { %p1918_p4 = por %p1908_p1, %p56_p0  ;;  %p1297_p5 = scmp.ge.s32.totalorder %s1819_s29, 1 }
   0xf   : > { %p1923_p6 = por %p227_p3, %p56_p0  ;;  %p234_p7 = scmp.lt.s32.totalorder %s1819_s29, 3 }
  0x10   : > { %s2112_s11 = scalar_select %p1918_p4, 1, 0 }
  0x11   : > { %s2113_s12 = scalar_select %p1923_p6, 1, 0 }
  0x12   : > { %p1928_p8 = pnand %p1297_p5, %p234_p7  ;;  %s1821_s14 = smov [#allocation7]  }
  0x13   : > { %s255_s15 = sshll.u32 %s1821_s14, 4  ;;  %s1822_s17 = smov [#allocation9]   ;;  %s256_s15 = int_to_ptr.vmem [resolvable:$true] %s255_s15 }
  0x14   : > { %p1458_p9 = pneg %p1928_p8  ;;  %s279_s18 = sshll.u32 %s1822_s17, 4  ;;  %s280_s18 = int_to_ptr.vmem [resolvable:$true] %s279_s18 }
  0x15   : > { %s1666_s19 = scalar_lea.vmem %s256_s15, 4096  ;;  %p1674_p5 = scmp.lt.s32.totalorder %s256_s15, %s256_s15 }
  0x16   : > { %p1937_p11 = pnand %p1458_p9, %p1908_p1  ;;  %p1667_p13 = scmp.ne.s32.totalorder %s256_s15, %s1666_s19 }
  0x17   : > { %p1675_p7 = scmp.lt.s32.totalorder %s1666_s19, %s1666_s19 }
  0x18   : > { %p1657_p12 = pneg %p1937_p11 }
  0x19   : > { %p1676_p10 = por %p1675_p7, %p1674_p5 }
  0x1a   : > { %p1669_p0 = pnand %p1667_p13, %p1657_p12 }
  0x1c   : > { %p1670_p3 = pneg %p1669_p0 }
  0x1e   : > { %p1677_p9 = pnand %p1676_p10, %p1670_p3 }
  0x20   : > { %1680 = shalt.err (!%p1677_p9)
}
  0x21   : > { %s1823_s20 = smov 256   ;;  %s1824_s21 = smov 16  }
  0x22   : > { %s2116_s3 = sld [smem:[#allocation15_spill]]  ;;  %s1692_s30 = scalar_lea.vmem %s280_s18, 4096 }
  0x23   : > { %p1693_p6 = scmp.ne.s32.totalorder %s280_s18, %s1692_s30  ;;  %p1700_p1 = scmp.lt.s32.totalorder %s280_s18, %s280_s18 }
  0x24   : > { %p1701_p4 = scmp.lt.s32.totalorder %s1692_s30, %s1692_s30 }
  0x25   : > { %p1695_p13 = pnand %p1693_p6, %p1657_p12 }
  0x26   : > { %p1702_p5 = por %p1701_p4, %p1700_p1 }
  0x27   : > { %p1696_p0 = pneg %p1695_p13 }
  0x28   : > { %1461 = dma.hbm_to_vmem [thread:$0]  (!%p1937_p11), %s2116_s3, 4096, %s256_s15, [#allocation8], %s1823_s20, %s1823_s20, %s1824_s21  }
  0x29   : > { %p1703_p10 = pnand %p1702_p5, %p1696_p0 }
  0x2b   : > { %1706 = shalt.err (!%p1703_p10)
}
  0x2c   : > { %s1825_s8 = smov 64   ;;  %s1826_s14 = smov 4  }
  0x2d   : > { %s2117_s5 = sld [smem:[#allocation16_spill]]  ;;  %s36_s19 = sadd.s32 1, %s1815_s28 }
  0x2e   : > { %s43_s20 = sadd.s32 1, %s1807_s26  ;;  %p38_p1 = scmp.ge.s32.totalorder %s36_s19, 2 }
  0x2f   : > { %p50_p4 = scmp.ne.s32.totalorder %s1807_s26, %s1803_s25  ;;  %p51_p6 = scmp.eq.s32.totalorder %s1819_s29, 0 }
  0x30   : > { %p1475_p12 = scmp.lt.s32.totalorder %s1819_s29, 2  ;;  %s2132_s19 = smov (%p38_p1, %s36_s19), 0 }
  0x31   : > { %2118 = sst [smem:[#allocation14_spill]] %s2132_s19  ;;  %p52_p3 = por %p51_p6, %p50_p4 }
  0x32   : > { %p1969_p7 = por %p1912_p2, %p50_p4  ;;  %s40_s16 = ssub.s32 %s1815_s28, %s2132_s19 }
  0x33   : > { %1464 = dma.hbm_to_vmem [thread:$0]  (!%p1937_p11), %s2117_s5, 4096, %s280_s18, [#allocation8], %s1825_s8, %s1825_s8, %s1826_s14  }
  0x34   : > { %s296_s22 = sand.u32 1, %s1807_s26   ;;  %p41_p9 = scmp.eq.s32.totalorder %s40_s16, 0 }
  0x35   : > { %s1302_s18 = sshll.u32 %s296_s22, 4  ;;  %s1393_s23 = sshll.u32 %s1815_s28, 8 }
  0x36   : > { %s1978_s30 = scalar_select %p41_p9, %s1807_s26, %s43_s20  }
  0x37   : > { %s306_s15 = scalar_lea.hbm %s2096_s0, %s1393_s23  ;;  %s300_s17 = scalar_lea.vmem [#allocation4], %s1302_s18 }
  0x38   : > { %s307_s3 = sshll.u32 %s300_s17, 4  ;;  %p1985_p11 = pnand %p1475_p12, %p52_p3  ;;  %s308_s3 = int_to_ptr.vmem [resolvable:$true] %s307_s3 }
  0x39   : > { %s297_s5 = scalar_lea.sflag [#allocation5], %s296_s22  ;;  %s1720_s16 = scalar_lea.vmem %s308_s3, 256 }
  0x3a   : > { %p1709_p2 = pneg %p1985_p11  ;;  %p1721_p13 = scmp.ne.s32.totalorder %s308_s3, %s1720_s16 }
  0x3b   : > { %s1827_s20 = smov [#allocation4]  }
  0x3c   : > { %p1723_p0 = pnand %p1721_p13, %p1709_p2  ;;  %s1725_s19 = sshll.u32 %s1827_s20, 4  ;;  %s1726_s19 = int_to_ptr.vmem [resolvable:$false] %s1725_s19 }
  0x3d   : > { %s1727_s23 = scalar_lea.vmem %s1726_s19, 512  ;;  %p1728_p10 = scmp.lt.s32.totalorder %s308_s3, %s1726_s19 }
  0x3e   : > { %p1724_p5 = pneg %p1723_p0  ;;  %p1729_p1 = scmp.lt.s32.totalorder %s1727_s23, %s1720_s16 }
  0x40   : > { %p1730_p4 = por %p1729_p1, %p1728_p10 }
  0x42   : > { %p1731_p6 = pnand %p1730_p4, %p1724_p5 }
  0x44   : > { %1734 = shalt.err (!%p1731_p6)
}
  0x45   : > { %s1828_s18 = smov 128   ;;  %s1829_s8 = smov 8  }
  0x46   : > { %1468 = dma.hbm_to_vmem [thread:$0]  (!%p1985_p11), %s306_s15, 256, %s308_s3, %s297_s5, %s1828_s18, %s1828_s18, %s1829_s8  }
  0x47   : > { %319 = sbr.rel (%p1928_p8) target bundleno = 859 (0x35b), region = 48  ;;  %s1996_s22 = sand.u32 (!%p1928_p8), 1, %s1803_s25  }
  0x48   : > { %s1306_s19 = sshll.u32 (!%p1928_p8), %s1996_s22, 4  ;;  %s322_s14 = scalar_lea.sflag (!%p1928_p8), [#allocation5], %s1996_s22 }
  0x49   : > { %s325_s17 = scalar_lea.vmem (!%p1928_p8), [#allocation4], %s1306_s19  ;;  %p2121_p12 = scmp.ne.s32.totalorder (!%p1928_p8), %s2112_s11, 0 }
  0x4c   : > { %1786 = dma.done.wait (%p2121_p12), %s322_s14, 256  }
  0x4d   : > { %1788 = vsyncadd (%p2121_p12), %s322_s14, 4294967040  ;;  %p2122_p3 = scmp.ne.s32.totalorder %s2110_s9, 0 }
  0x4f   : > { %1790 = dma.done.wait (%p2122_p3), [#allocation8], 8192  }
  0x50   : > { %1792 = vsyncadd (%p2122_p3), [#allocation8], 4294959104  ;;  %v382_v0 = vld [vmem:[%s325_s17] sm:$0xff]  ;;  %v383_v1 = vld [vmem:[%s325_s17 + $0x8] sm:$0xff]  ;;  %v1830_v42 = vmov 0   ;;  %s367_s20 = scalar_lea.vmem [#allocation10], %s1306_s19 }
  0x51   : > { %384 = vadd.xlane.f32.xlu0 %v382_v0  ;;  %v1538_v10 = vld [vmem:[#allocation7 + $0xe4] ss:$16 sps:$4 sm:$0xff]   ;;  %v1540_v11 = vld [vmem:[#allocation7 + $0xec] ss:$16 sps:$4 sm:$0xff]   ;;  %v1542_v12 = vld [vmem:[#allocation7 + $0xe0] ss:$16 sps:$4 sm:$0xff]   ;;  %691 = vmatprep.mubr.bf16.mxu0 %v1830_v42 }
  0x52   : > { %v1543_v13 = vld [vmem:[#allocation7 + $0xe8] ss:$16 sps:$4 sm:$0xff]   ;;  %659 = vmatprep.subr.bf16.mxu0 %v1538_v10  ;;  %702 = vmatprep.subr.bf16.mxu1 %v1540_v11  ;;  %v1544_v14 = vld [vmem:[#allocation7 + $0xc4] ss:$16 sps:$4 sm:$0xff]   ;;  %v1546_v15 = vld [vmem:[#allocation7 + $0xcc] ss:$16 sps:$4 sm:$0xff]  }
  0x53   : > { %660 = vmatpush1.bf16.msra.mxu0 %v1542_v12  ;;  %703 = vmatpush1.bf16.msra.mxu1 %v1543_v13  ;;  %v1548_v16 = vld [vmem:[#allocation7 + $0xc0] ss:$16 sps:$4 sm:$0xff]   ;;  %v1549_v17 = vld [vmem:[#allocation7 + $0xc8] ss:$16 sps:$4 sm:$0xff]   ;;  %v1550_v18 = vld [vmem:[#allocation7 + $0xa4] ss:$16 sps:$4 sm:$0xff]  }
  0x54   : > { %661 = vmatprep.subr.bf16.mxu0 %v1544_v14  ;;  %704 = vmatprep.subr.bf16.mxu1 %v1546_v15  ;;  %v1552_v19 = vld [vmem:[#allocation7 + $0xac] ss:$16 sps:$4 sm:$0xff]   ;;  %v1554_v20 = vld [vmem:[#allocation7 + $0xa0] ss:$16 sps:$4 sm:$0xff]   ;;  %v1555_v21 = vld [vmem:[#allocation7 + $0xa8] ss:$16 sps:$4 sm:$0xff]  }
  0x55   : > { %386 = vadd.xlane.f32.xlu0 %v383_v1  ;;  %v1556_v22 = vld [vmem:[#allocation7 + $0x84] ss:$16 sps:$4 sm:$0xff]   ;;  %v1558_v23 = vld [vmem:[#allocation7 + $0x8c] ss:$16 sps:$4 sm:$0xff]   ;;  %v1560_v24 = vld [vmem:[#allocation7 + $0x80] ss:$16 sps:$4 sm:$0xff]   ;;  %734 = vmatprep.mubr.bf16.mxu1 %v1830_v42 }
  0x56   : > { %v1561_v25 = vld [vmem:[#allocation7 + $0x88] ss:$16 sps:$4 sm:$0xff]   ;;  %v1562_v26 = vld [vmem:[#allocation7 + $0x64] ss:$16 sps:$4 sm:$0xff]   ;;  %v1564_v27 = vld [vmem:[#allocation7 + $0x6c] ss:$16 sps:$4 sm:$0xff]  }
  0x57   : > { %662 = vmatpush1.bf16.msra.mxu0 %v1548_v16  ;;  %705 = vmatpush1.bf16.msra.mxu1 %v1549_v17  ;;  %v1566_v28 = vld [vmem:[#allocation7 + $0x60] ss:$16 sps:$4 sm:$0xff]   ;;  %v1567_v29 = vld [vmem:[#allocation7 + $0x68] ss:$16 sps:$4 sm:$0xff]   ;;  %v1568_v30 = vld [vmem:[#allocation7 + $0x44] ss:$16 sps:$4 sm:$0xff]  }
  0x58   : > { %663 = vmatprep.subr.bf16.mxu0 %v1550_v18  ;;  %706 = vmatprep.subr.bf16.mxu1 %v1552_v19  ;;  %v1570_v31 = vld [vmem:[#allocation7 + $0x4c] ss:$16 sps:$4 sm:$0xff]   ;;  %v1572_v32 = vld [vmem:[#allocation7 + $0x40] ss:$16 sps:$4 sm:$0xff]   ;;  %v1573_v33 = vld [vmem:[#allocation7 + $0x48] ss:$16 sps:$4 sm:$0xff]  }
  0x59   : > { %v1574_v34 = vld [vmem:[#allocation7 + $0x24] ss:$16 sps:$4 sm:$0xff]   ;;  %v1576_v35 = vld [vmem:[#allocation7 + $0x2c] ss:$16 sps:$4 sm:$0xff]   ;;  %v1578_v36 = vld [vmem:[#allocation7 + $0x20] ss:$16 sps:$4 sm:$0xff]  }
  0x5a   : > { %v1579_v37 = vld [vmem:[#allocation7 + $0x28] ss:$16 sps:$4 sm:$0xff]   ;;  %v1580_v38 = vld [vmem:[#allocation7 + $0x4] ss:$16 sps:$4 sm:$0xff]   ;;  %v1582_v39 = vld [vmem:[#allocation7 + $0xc] ss:$16 sps:$4 sm:$0xff]  }
  0x5b   : > { %664 = vmatpush1.bf16.msra.mxu0 %v1554_v20  ;;  %707 = vmatpush1.bf16.msra.mxu1 %v1555_v21  ;;  %v1584_v40 = vld [vmem:[#allocation7] ss:$16 sps:$4 sm:$0xff]   ;;  %v1585_v41 = vld [vmem:[#allocation7 + $0x8] ss:$16 sps:$4 sm:$0xff]   ;;  %s1179_s23 = sshll.u32 %s367_s20, 4  ;;  %s1396_s18 = sshll.u32 %s1811_s27, 8  ;;  %s2043_s23 = int_to_ptr.vmem [resolvable:$true] %s1179_s23 }
  0x5c   : > { %665 = vmatprep.subr.bf16.mxu0 %v1556_v22  ;;  %708 = vmatprep.subr.bf16.mxu1 %v1558_v23  ;;  %v1310_v51 = vld [vmem:[%s2097_s1] ss:$0 sm:$0xff]  ;;  %v1600_v10 = vld [vmem:[#allocation9 + $0xe0] sm:$0xff]   ;;  %v1607_v17 = vld [vmem:[#allocation9 + $0x50] sm:$0xff]   ;;  %s2048_s17 = scalar_lea.hbm %s2103_s7, %s1396_s18  ;;  %s1166_s19 = scalar_lea.sflag [#allocation6], %s1996_s22 }
  0x5d   : > { %v1311_v55 = vld [vmem:[%s2098_s2] ss:$0 sm:$0xff]  ;;  %v1601_v11 = vld [vmem:[#allocation9 + $0x20] sm:$0xff]   ;;  %v1608_v18 = vld [vmem:[#allocation9 + $0xd0] sm:$0xff]   ;;  %s1735_s3 = scalar_lea.vmem %s2043_s23, 256  ;;  %s1831_s27 = smov [#allocation10]  }
  0x5e   : > { %v1587_v61 = vld [vmem:[#allocation9 + $0x78] sm:$0xff]   ;;  %v1602_v12 = vld [vmem:[#allocation9 + $0xa0] sm:$0xff]   ;;  %v1609_v19 = vld [vmem:[#allocation9 + $0x10] sm:$0xff]   ;;  %p1736_p8 = scmp.ne.s32.totalorder %s2043_s23, %s1735_s3  ;;  %s1739_s5 = sshll.u32 %s1831_s27, 4  ;;  %s1740_s5 = int_to_ptr.vmem [resolvable:$false] %s1739_s5 }
  0x5f   : > { %666 = vmatpush1.bf16.msra.mxu0 %v1560_v24  ;;  %709 = vmatpush1.bf16.msra.mxu1 %v1561_v25  ;;  %v1588_v62 = vld [vmem:[#allocation9 + $0xf8] sm:$0xff]   ;;  %v1610_v20 = vld [vmem:[#allocation9 + $0x90] sm:$0xff]   ;;  %v1611_v21 = vld [vmem:[#allocation9 + $0x48] sm:$0xff]   ;;  %s1741_s9 = scalar_lea.vmem %s1740_s5, 512  ;;  %p1742_p2 = scmp.lt.s32.totalorder %s2043_s23, %s1740_s5 }
  0x60   : > { %667 = vmatprep.subr.bf16.mxu0 %v1562_v26  ;;  %710 = vmatprep.subr.bf16.mxu1 %v1564_v27  ;;  %v1589_v63 = vld [vmem:[#allocation9 + $0x38] sm:$0xff]   ;;  %v1612_v22 = vld [vmem:[#allocation9 + $0xc8] sm:$0xff]   ;;  %v1615_v25 = vld [vmem:[#allocation9 + $0x40] sm:$0xff]   ;;  %p1737_p9 = pnand %p1736_p8, %p1969_p7  ;;  %p1743_p13 = scmp.lt.s32.totalorder %s1741_s9, %s1735_s3 }
  0x61   : > { %v1603_v13 = vld [vmem:[#allocation9 + $0x58] sm:$0xff]   ;;  %v1613_v23 = vld [vmem:[#allocation9 + $0x8] sm:$0xff]   ;;  %v1616_v26 = vld [vmem:[#allocation9 + $0xc0] sm:$0xff]  }
  0x62   : > { %v1604_v14 = vld [vmem:[#allocation9 + $0xd8] sm:$0xff]   ;;  %v1614_v24 = vld [vmem:[#allocation9 + $0x88] sm:$0xff]   ;;  %v1617_v27 = vld [vmem:[#allocation9] sm:$0xff]   ;;  %p1738_p11 = pneg %p1737_p9  ;;  %p1744_p0 = por %p1743_p13, %p1742_p2 }
  0x63   : > { %668 = vmatpush1.bf16.msra.mxu0 %v1566_v28  ;;  %711 = vmatpush1.bf16.msra.mxu1 %v1567_v29  ;;  %v1605_v15 = vld [vmem:[#allocation9 + $0x18] sm:$0xff]   ;;  %v1618_v28 = vld [vmem:[#allocation9 + $0x80] sm:$0xff]   ;;  %v473_v29 = vlaneseq }
  0x64   : > { %669 = vmatprep.subr.bf16.mxu0 %v1568_v30  ;;  %712 = vmatprep.subr.bf16.mxu1 %v1570_v31  ;;  %v1606_v16 = vld [vmem:[#allocation9 + $0x98] sm:$0xff]   ;;  %p1745_p5 = pnand %p1744_p0, %p1738_p11 }
  0x65   : > { %v474_v30 = vshrl.u32 %v473_v29, 7 }
  0x67   : > { %670 = vmatpush1.bf16.msra.mxu0 %v1572_v32  ;;  %713 = vmatpush1.bf16.msra.mxu1 %v1573_v33  ;;  %v475_v31 = vsub.s32 0, %v474_v30  ;;  %v483_v32 = vsub.s32 2, %v474_v30  ;;  %v471_v33 = vld [vmem:[%s2100_s4] sm:$0xf] }
  0x68   : > { %671 = vmatprep.subr.bf16.mxu0 %v1574_v34  ;;  %714 = vmatprep.subr.bf16.mxu1 %v1576_v35  ;;  %v479_v34 = vsub.s32 1, %v474_v30  ;;  %v487_v35 = vsub.s32 3, %v474_v30 }
  0x6b   : > { %672 = vmatpush1.bf16.msra.mxu0 %v1578_v36  ;;  %715 = vmatpush1.bf16.msra.mxu1 %v1579_v37  ;;  %v476_v36 = vrot.slane %v471_v33, %v475_v31  ;;  %v484_v37 = vrot.slane %v471_v33, %v483_v32 }
  0x6c   : > { %673 = vmatprep.subr.bf16.mxu0 %v1580_v38  ;;  %716 = vmatprep.subr.bf16.mxu1 %v1582_v39  ;;  %v480_v38 = vrot.slane %v471_v33, %v479_v34  ;;  %v488_v39 = vrot.slane %v471_v33, %v487_v35 }
  0x6f   : > { %674 = vmatpush1.bf16.msra.mxu0 %v1584_v40  ;;  %717 = vmatpush1.bf16.msra.mxu1 %v1585_v41 }
  0x70   : > { %1402 = vmatprep.subr.bf16.mxu0 %v1587_v61  ;;  %1424 = vmatprep.subr.bf16.mxu1 %v1588_v62 }
  0xda   : > { %v385_v2 = vpop.xlane.xlu0 %384 }
  0xdb   : > { %v389_v3 = vmul.f32 0.0078125, %v385_v2  ;;  %v1592_v2 = vld [vmem:[#allocation9 + $0xf0] sm:$0xff]  }
  0xdd   : > { %v2010_v4 = vsub.f32 %v382_v0, %v389_v3  ;;  %v1590_v0 = vld [vmem:[#allocation9 + $0xb8] sm:$0xff]   ;;  %v1593_v3 = vld [vmem:[#allocation9 + $0x30] sm:$0xff]  }
  0xde   : > { %v387_v5 = vpop.xlane.xlu0 %386 }
  0xdf   : > { %v390_v6 = vmul.f32 0.0078125, %v387_v5  ;;  %v393_v7 = vmul.f32 %v2010_v4, %v2010_v4  ;;  %v1595_v5 = vld [vmem:[#allocation9 + $0x68] sm:$0xff]  }
  0xe1   : > { %v2014_v8 = vsub.f32 %v383_v1, %v390_v6  ;;  %395 = vadd.xlane.f32.xlu1 %v393_v7  ;;  %v1591_v1 = vld [vmem:[#allocation9 + $0x70] sm:$0xff]   ;;  %v1596_v6 = vld [vmem:[#allocation9 + $0xe8] sm:$0xff]  }
  0xe2   : > { %v1597_v7 = vld [vmem:[#allocation9 + $0x28] sm:$0xff]  }
  0xe3   : > { %v394_v9 = vmul.f32 %v2014_v8, %v2014_v8 }
  0xe5   : > { %397 = vadd.xlane.f32.xlu1 %v394_v9  ;;  %v1599_v9 = vld [vmem:[#allocation9 + $0x60] sm:$0xff]  }
 0x16a   : > { %v396_v43 = vpop.xlane.xlu1 %395 }
 0x16b   : > { %v399_v44 = vmul.f32 0.0078125, %v396_v43 }
 0x16d   : > { %v401_v45 = vadd.f32 1e-05, %v399_v44 }
 0x16e   : > { %v398_v46 = vpop.xlane.xlu1 %397 }
 0x16f   : > { %1619 = vrsqrt.f32 %v401_v45  ;;  %v400_v47 = vmul.f32 0.0078125, %v398_v46 }
 0x171   : > { %v402_v48 = vadd.f32 1e-05, %v400_v47 }
 0x173   : > { %1621 = vrsqrt.f32 %v402_v48 }
 0x17c   : > { %v1620_v49 = vpop.eup %1619 }
 0x17d   : > { %v405_v50 = vmul.f32 %v1620_v49, %v2010_v4  ;;  %v1594_v4 = vld [vmem:[#allocation9 + $0xb0] sm:$0xff]  }
 0x17f   : > { %v414_v53 = vmul.f32 %v1310_v51, %v405_v50 }
 0x180   : > { %v1622_v52 = vpop.eup %1621 }
 0x181   : > { %v406_v54 = vmul.f32 %v1622_v52, %v2014_v8  ;;  %v423_v57 = vadd.f32 %v1311_v55, %v414_v53  ;;  %v1598_v8 = vld [vmem:[#allocation9 + $0xa8] sm:$0xff]  }
 0x183   : > { %v415_v56 = vmul.f32 %v1310_v51, %v406_v54 }
 0x185   : > { %v424_v58 = vadd.f32 %v1311_v55, %v415_v56 }
 0x187   : > { %v1400_v59 = vpack.c.bf16 %v424_v58, %v423_v57 }
 0x189   : > { %1401 = vst [vmem:[#allocation2] sm:$0xff] %v1400_v59  }
 0x190   : > { %v1586_v60 = vld [vmem:[#allocation2] sm:$0xff]  }
 0x191   : > { %692 = vmatmul.mubr.bf16.vlgmr.msra.gmra.mxu0 %v1586_v60  ;;  %735 = vmatmul.mubr.bf16.vlgmr.msra.gmra.mxu1 %v1586_v60 }
 0x192   : > { %1403 = vmatpush3.bf16.msra.mxu0 %v1589_v63  ;;  %1425 = vmatpush3.bf16.msra.mxu1 %v1590_v0 }
 0x193   : > { %1404 = vmatprep.subr.bf16.mxu0 %v1591_v1  ;;  %1426 = vmatprep.subr.bf16.mxu1 %v1592_v2 }
 0x196   : > { %1405 = vmatpush3.bf16.msra.mxu0 %v1593_v3  ;;  %1427 = vmatpush3.bf16.msra.mxu1 %v1594_v4 }
 0x197   : > { %1406 = vmatprep.subr.bf16.mxu0 %v1595_v5  ;;  %1428 = vmatprep.subr.bf16.mxu1 %v1596_v6 }
 0x19a   : > { %1407 = vmatpush3.bf16.msra.mxu0 %v1597_v7  ;;  %1429 = vmatpush3.bf16.msra.mxu1 %v1598_v8 }
 0x19b   : > { %1408 = vmatprep.subr.bf16.mxu0 %v1599_v9  ;;  %1430 = vmatprep.subr.bf16.mxu1 %v1600_v10 }
 0x19e   : > { %1409 = vmatpush3.bf16.msra.mxu0 %v1601_v11  ;;  %1431 = vmatpush3.bf16.msra.mxu1 %v1602_v12 }
 0x19f   : > { %1410 = vmatprep.subr.bf16.mxu0 %v1603_v13  ;;  %1432 = vmatprep.subr.bf16.mxu1 %v1604_v14 }
 0x1a2   : > { %1411 = vmatpush3.bf16.msra.mxu0 %v1605_v15  ;;  %1433 = vmatpush3.bf16.msra.mxu1 %v1606_v16 }
 0x1a3   : > { %1412 = vmatprep.subr.bf16.mxu0 %v1607_v17  ;;  %1434 = vmatprep.subr.bf16.mxu1 %v1608_v18 }
 0x1a6   : > { %1413 = vmatpush3.bf16.msra.mxu0 %v1609_v19  ;;  %1435 = vmatpush3.bf16.msra.mxu1 %v1610_v20 }
 0x1a7   : > { %1414 = vmatprep.subr.bf16.mxu0 %v1611_v21  ;;  %1436 = vmatprep.subr.bf16.mxu1 %v1612_v22 }
 0x1aa   : > { %1415 = vmatpush3.bf16.msra.mxu0 %v1613_v23  ;;  %1437 = vmatpush3.bf16.msra.mxu1 %v1614_v24 }
 0x1ab   : > { %1416 = vmatprep.subr.bf16.mxu0 %v1615_v25  ;;  %1438 = vmatprep.subr.bf16.mxu1 %v1616_v26 }
 0x1ae   : > { %1417 = vmatpush3.bf16.msra.mxu0 %v1617_v27  ;;  %1439 = vmatpush3.bf16.msra.mxu1 %v1618_v28 }
 0x251   : > { %v693_v40 = vpop.f32.mrf.mxu0  ;;  %v736_v41 = vpop.f32.mrf.mxu1 }
 0x252   : > { %v2029_v42 = vadd.f32 %v693_v40, %v476_v36  ;;  %v2031_v43 = vadd.f32 %v736_v41, %v484_v37 }
 0x253   : > { %v695_v44 = vpop.f32.mrf.mxu0  ;;  %v738_v45 = vpop.f32.mrf.mxu1 }
 0x254   : > { %v1347_v46 = vmul.f32 -1.442695, %v2029_v42  ;;  %v1349_v47 = vmul.f32 -1.442695, %v2031_v43  ;;  %v696_v48 = vadd.f32 %v695_v44, %v480_v38  ;;  %v739_v49 = vadd.f32 %v738_v45, %v488_v39 }
 0x255   : > { %v697_v50 = vpop.f32.mrf.mxu0  ;;  %v740_v51 = vpop.f32.mrf.mxu1 }
 0x256   : > { %1623 = vpow2.f32 %v1347_v46  ;;  %v1348_v52 = vmul.f32 -1.442695, %v696_v48  ;;  %v1350_v53 = vmul.f32 -1.442695, %v739_v49  ;;  %v698_v54 = vadd.f32 %v697_v50, %v476_v36 }
 0x257   : > { %1625 = vpow2.f32 %v1349_v47  ;;  %v741_v55 = vadd.f32 %v740_v51, %v484_v37  ;;  %v699_v56 = vpop.f32.mrf.mxu0  ;;  %v742_v57 = vpop.f32.mrf.mxu1 }
 0x258   : > { %1627 = vpow2.f32 %v1348_v52  ;;  %v1351_v58 = vmul.f32 -1.442695, %v698_v54  ;;  %v700_v59 = vadd.f32 %v699_v56, %v480_v38  ;;  %v743_v60 = vadd.f32 %v742_v57, %v488_v39 }
 0x259   : > { %1629 = vpow2.f32 %v1350_v53  ;;  %v1353_v61 = vmul.f32 -1.442695, %v741_v55 }
 0x25a   : > { %1631 = vpow2.f32 %v1351_v58  ;;  %v1352_v62 = vmul.f32 -1.442695, %v700_v59  ;;  %v1354_v63 = vmul.f32 -1.442695, %v743_v60 }
 0x25b   : > { %1633 = vpow2.f32 %v1353_v61 }
 0x25c   : > { %1635 = vpow2.f32 %v1352_v62 }
 0x25d   : > { %1637 = vpow2.f32 %v1354_v63 }
 0x263   : > { %v1624_v0 = vpop.eup %1623 }
 0x264   : > { %v1626_v1 = vpop.eup %1625  ;;  %v769_v2 = vadd.f32 1.0, %v1624_v0 }
 0x265   : > { %v1628_v3 = vpop.eup %1627  ;;  %v771_v4 = vadd.f32 1.0, %v1626_v1 }
 0x266   : > { %v1630_v5 = vpop.eup %1629  ;;  %1639 = vrcp.f32 %v769_v2  ;;  %v770_v6 = vadd.f32 1.0, %v1628_v3 }
 0x267   : > { %v1632_v7 = vpop.eup %1631  ;;  %1641 = vrcp.f32 %v771_v4  ;;  %v772_v8 = vadd.f32 1.0, %v1630_v5 }
 0x268   : > { %v1634_v9 = vpop.eup %1633  ;;  %1643 = vrcp.f32 %v770_v6  ;;  %v773_v10 = vadd.f32 1.0, %v1632_v7 }
 0x269   : > { %v1636_v11 = vpop.eup %1635  ;;  %1645 = vrcp.f32 %v772_v8  ;;  %v775_v12 = vadd.f32 1.0, %v1634_v9 }
 0x26a   : > { %v1638_v13 = vpop.eup %1637  ;;  %1647 = vrcp.f32 %v773_v10  ;;  %v774_v14 = vadd.f32 1.0, %v1636_v11 }
 0x26b   : > { %1649 = vrcp.f32 %v775_v12  ;;  %v776_v15 = vadd.f32 1.0, %v1638_v13 }
 0x26c   : > { %1651 = vrcp.f32 %v774_v14 }
 0x26d   : > { %1653 = vrcp.f32 %v776_v15 }
 0x273   : > { %v1640_v16 = vpop.eup %1639 }
 0x274   : > { %v1642_v17 = vpop.eup %1641  ;;  %v793_v28 = vmul.f32 %v1640_v16, %v2029_v42 }
 0x275   : > { %v1644_v18 = vpop.eup %1643  ;;  %v795_v31 = vmul.f32 %v1642_v17, %v2031_v43  ;;  %v1387_v43 = vld [vmem:[%s2102_s6] ss:$0 sm:$0xff] }
 0x276   : > { %v1646_v19 = vpop.eup %1645  ;;  %v794_v25 = vmul.f32 %v1644_v18, %v696_v48 }
 0x277   : > { %v1648_v20 = vpop.eup %1647  ;;  %v796_v29 = vmul.f32 %v1646_v19, %v739_v49 }
 0x278   : > { %v1650_v21 = vpop.eup %1649  ;;  %v797_v23 = vmul.f32 %v1648_v20, %v698_v54 }
 0x279   : > { %v1652_v22 = vpop.eup %1651  ;;  %v799_v26 = vmul.f32 %v1650_v21, %v741_v55 }
 0x27a   : > { %v1654_v24 = vpop.eup %1653  ;;  %v798_v27 = vmul.f32 %v1652_v22, %v700_v59  ;;  %v803_v33 = vpack.c.bf16 %v797_v23, %v793_v28 }
 0x27b   : > { %v800_v30 = vmul.f32 %v1654_v24, %v743_v60  ;;  %v805_v35 = vpack.c.bf16 %v799_v26, %v795_v31 }
 0x27c   : > { %v804_v32 = vpack.c.bf16 %v798_v27, %v794_v25 }
 0x27d   : > { %v806_v34 = vpack.c.bf16 %v800_v30, %v796_v29 }
 0x27e   : > { %1095 = vmatprep.mubr.bf16.mxu0 %v804_v32 }
 0x27f   : > { %1136 = vmatprep.mubr.bf16.mxu1 %v806_v34  ;;  %1096 = vmatmul.mubr.bf16.vlgmr.msra.gmra.mxu0 %v803_v33 }
 0x280   : > { %1137 = vmatmul.mubr.bf16.vlgmr.msra.gmra.mxu1 %v805_v35 }
 0x33f   : > { %v1418_v36 = vpop.f32.mrf.mxu0 }
 0x340   : > { %v1440_v37 = vpop.f32.mrf.mxu1 }
 0x341   : > { %v1419_v38 = vpop.f32.mrf.mxu0 }
 0x342   : > { %v1420_v39 = vadd.f32 %v1419_v38, %v1418_v36  ;;  %v1441_v40 = vpop.f32.mrf.mxu1 }
 0x343   : > { %v1442_v41 = vadd.f32 %v1441_v40, %v1440_v37  ;;  %v1421_v42 = vpop.f32.mrf.mxu0 }
 0x344   : > { %v1443_v44 = vpop.f32.mrf.mxu1 }
 0x345   : > { %v1139_v45 = vadd.f32 %v1442_v41, %v1420_v39  ;;  %v1422_v46 = vpop.f32.mrf.mxu0 }
 0x346   : > { %v1423_v47 = vadd.f32 %v1422_v46, %v1421_v42  ;;  %v1444_v48 = vpop.f32.mrf.mxu1 }
 0x347   : > { %v1161_v49 = vadd.f32 %v1387_v43, %v1139_v45  ;;  %v1445_v50 = vadd.f32 %v1444_v48, %v1443_v44 }
 0x349   : > { %1163 = vst [vmem:[%s367_s20] sm:$0xff] %v1161_v49  ;;  %v1142_v51 = vadd.f32 %v1445_v50, %v1423_v47 }
 0x34b   : > { %v1162_v52 = vadd.f32 %v1387_v43, %v1142_v51 }
 0x34d   : > { %1164 = vst [vmem:[%s367_s20 + $0x8] sm:$0xff] %v1162_v52 }
 0x34e   : > { %1748 = shalt.err (!%p1745_p5)
}
 0x34f   : > { %s1749_s11 = scalar_lea.hbm %s2048_s17, 256  ;;  %s1753_s10 = scalar_lea.hbm %s2103_s7, 512 }
 0x350   : > { %p1750_p10 = scmp.ne.s32.totalorder %s2048_s17, %s1749_s11  ;;  %p1754_p6 = scmp.lt.s32.totalorder %s2048_s17, %s2103_s7 }
 0x351   : > { %p1755_p12 = scmp.lt.s32.totalorder %s1753_s10, %s1749_s11 }
 0x352   : > { %p1751_p1 = pnand %p1750_p10, %p1969_p7 }
 0x353   : > { %p1756_p3 = por %p1755_p12, %p1754_p6 }
 0x354   : > { %p1752_p4 = pneg %p1751_p1 }
 0x356   : > { %p1757_p8 = pnand %p1756_p3, %p1752_p4 }
 0x358   : > { %1760 = shalt.err (!%p1757_p8)
}
 0x359   : > { %s1832_s18 = smov 128   ;;  %s1833_s8 = smov 8  }
 0x35a   : > { %1456 = dma.vmem_to_hbm [thread:$0]  (%p1969_p7), %s2043_s23, 256, %s2048_s17, %s1166_s19, %s1832_s18, %s1832_s18, %s1833_s8  }
 0x35b PF: > { %s1194_s14 = sand.u32 1, %s1799_s24   ;;  %p2123_p9 = scmp.ne.s32.totalorder %s2113_s12, 0 }
 0x35c   : > { %p2124_p11 = scmp.ge.s32.totalorder %s1819_s29, 2  ;;  %s1195_s3 = scalar_lea.sflag [#allocation6], %s1194_s14 }
 0x35e   : > { %p1470_p2 = pnand %p2124_p11, %p2123_p9 }
 0x360   : > { %p1471_p13 = pneg %p1470_p2 }
 0x362   : > { %1794 = dma.done.wait (%p1471_p13), %s1195_s3, 256  }
 0x363   : > { %1796 = vsyncadd (%p1471_p13), %s1195_s3, 4294967040  ;;  %s24_s29 = sadd.s32 1, %s1819_s29   ;;  %s2125_s21 = sld [smem:[#allocation14_spill]] }
 0x364   : > { %p21_p0 = scmp.ge.s32.totalorder %s24_s29, 4   ;;  %s2126_s24 = smov %s1803_s25 }
 0x365   : > { %s2127_s25 = smov %s1807_s26  ;;  %s2128_s26 = smov %s1978_s30 }
 0x366   : > { %s2129_s27 = smov %s1815_s28  ;;  %23 = sbr.rel (!%p21_p0) target bundleno = 10 (0xa), region = 114 }
 0x369   : > { %s2130_s28 = smov %s2125_s21 }
 0x36b   :  { %1200 = vsyncpa [#allocation5], 1 }
 0x36c   :  { %1202 = vsyncpa [#allocation5 + $0x1], 1 }
 0x36d   :  { %1203 = vsyncpa [#allocation8], 1 }
 0x36e   :  { %1204 = vsyncpa [#allocation6], 1 }
 0x36f   :  { %1206 = vsyncpa [#allocation6 + $0x1], 1 }

</bundles_post_ra>
